<compile_context>
chip_gen: v7x
topology: tpu7x:2x2x1
jax: 0.10.0
libtpu: 0.0.40
codegen_flags: <defaults>
</compile_context>

<pallas_src>
import jax
import jax.numpy as jnp
from jax.experimental import pallas as pl
from jax.experimental.pallas import tpu as pltpu

_LANES = 128           # lane-dense last dim
_MAX_ROW_TILE = 2048   # rows per grid step (2048*128*4B = 1 MiB per stream/buf)


def _ema_kernel(scalars_ref, hidden_ref, value_ref, new_hidden_ref, avg_ref):
    """Elementwise EMA update + bias-corrected average on one (TM, 128) tile.

    scalars_ref (SMEM, scalar-prefetch): [1 - decay, 1 / (1 - decay**counter)]
    hidden_ref / value_ref (VMEM):       input tiles
    new_hidden_ref / avg_ref (VMEM):     output tiles
    """
    one_minus_decay = scalars_ref[0]
    inv_bias_corr = scalars_ref[1]

    h = hidden_ref[...].astype(jnp.float32)
    v = value_ref[...].astype(jnp.float32)

    new_h = h - (h - v) * one_minus_decay
    new_hidden_ref[...] = new_h.astype(new_hidden_ref.dtype)
    avg_ref[...] = (new_h * inv_bias_corr).astype(avg_ref.dtype)


def _round_up(x, m):
    return ((x + m - 1) // m) * m


def ema_forward(hidden, value, decay, counter):
    """One forward step of ExponentialMovingAverage.

    Args:
      hidden:  float array, the EMA hidden state (same shape/dtype as value).
      value:   float array, the new observation.
      decay:   python float, EMA decay.
      counter: python int or traced int32, number of updates so far.

    Returns:
      (average, new_hidden, new_counter)
    """
    assert hidden.shape == value.shape and hidden.dtype == value.dtype
    orig_shape = hidden.shape
    dtype = hidden.dtype
    new_counter = counter + 1

    # Scalar glue -> SMEM via scalar prefetch. Use Python float math when the
    # counter is concrete (matches the PyTorch module's double precision);
    # fall back to traced f32 math so a jitted int32 counter does not retrace.
    if isinstance(new_counter, int):
        scalars = jnp.array(
            [1.0 - decay, 1.0 / (1.0 - decay ** new_counter)], dtype=jnp.float32
        )
    else:
        cnt_f = jnp.asarray(new_counter, jnp.float32)
        decay_f = jnp.float32(decay)
        scalars = jnp.stack(
            [jnp.float32(1.0) - decay_f,
             jnp.float32(1.0) / (jnp.float32(1.0) - decay_f ** cnt_f)]
        ).astype(jnp.float32)

    # ---- Reshape to a lane-dense (rows, 128) slab and tile along rows. ----
    n = hidden.size
    rows = pl.cdiv(n, _LANES)
    if rows >= _MAX_ROW_TILE:
        row_tile = _MAX_ROW_TILE
    else:
        row_tile = _round_up(rows, 8)          # sublane-aligned single tile
    rows_padded = _round_up(rows, row_tile)
    n_padded = rows_padded * _LANES

    def to_slab(x):
        flat = x.reshape(-1)
        if n_padded != n:
            flat = jnp.pad(flat, (0, n_padded - n))
        return flat.reshape(rows_padded, _LANES)

    hidden2d = to_slab(hidden)
    value2d = to_slab(value)

    grid = (rows_padded // row_tile,)
    block = pl.BlockSpec((row_tile, _LANES), lambda i, s: (i, 0))

    new_hidden2d, avg2d = pl.pallas_call(
        _ema_kernel,
        out_shape=(
            jax.ShapeDtypeStruct((rows_padded, _LANES), dtype),
            jax.ShapeDtypeStruct((rows_padded, _LANES), dtype),
        ),
        grid_spec=pltpu.PrefetchScalarGridSpec(
            num_scalar_prefetch=1,
            grid=grid,
            in_specs=[block, block],
            out_specs=[block, block],
        ),
        compiler_params=pltpu.CompilerParams(
            dimension_semantics=("parallel",),
        ),
        # Inputs are (scalars, hidden2d, value2d) -> donate the hidden slab to
        # the new_hidden output (output 0); avoids a second HBM buffer for the
        # updated state.
        input_output_aliases={1: 0},
    )(scalars, hidden2d, value2d)

    def from_slab(x2d):
        return x2d.reshape(-1)[:n].reshape(orig_shape)

    return from_slab(avg2d), from_slab(new_hidden2d), new_counter


if __name__ == "__main__":
    key = jax.random.PRNGKey(0)

    # Small VQ-VAE-ish codebook stats: 32 embeddings x 64 dims.
    num_embeddings, embedding_dim = 32, 64
    decay = 0.99

    # Module __init__: hidden starts at zeros, counter at 0.
    hidden = jnp.zeros((num_embeddings, embedding_dim), dtype=jnp.float32)
    counter = 0

    # Deterministic example input "value".
    value = jax.random.normal(key, (num_embeddings, embedding_dim), jnp.float32)

    # Run one forward step.
    average, hidden, counter = ema_forward(hidden, value, decay, counter)
    average = jax.block_until_ready(average)
    hidden = jax.block_until_ready(hidden)

    # Reference check in plain JAX (same math as the PyTorch module).
    ref_hidden = jnp.zeros_like(value)
    ref_hidden = ref_hidden - (ref_hidden - value) * (1.0 - decay)
    ref_average = ref_hidden / (1.0 - decay ** 1)

    assert jnp.allclose(average, ref_average, atol=1e-5, rtol=1e-5)
    assert jnp.allclose(hidden, ref_hidden, atol=1e-5, rtol=1e-5)

    # Run a second step to exercise the counter / bias-correction path.
    key2 = jax.random.fold_in(key, 1)
    value2 = jax.random.normal(key2, (num_embeddings, embedding_dim), jnp.float32)
    average2, hidden2, counter = ema_forward(hidden, value2, decay, counter)
    average2 = jax.block_until_ready(average2)
    hidden2 = jax.block_until_ready(hidden2)

    ref_hidden = ref_hidden - (ref_hidden - value2) * (1.0 - decay)
    ref_average2 = ref_hidden / (1.0 - decay ** 2)
    assert jnp.allclose(average2, ref_average2, atol=1e-5, rtol=1e-5)
    assert jnp.allclose(hidden2, ref_hidden, atol=1e-5, rtol=1e-5)

    # Also exercise the multi-tile grid path with a larger, padded size.
    big_shape = (3000, 97)          # not lane/tile aligned -> pad path
    big_hidden = jnp.zeros(big_shape, jnp.float32)
    big_value = jax.random.normal(jax.random.fold_in(key, 2), big_shape, jnp.float32)
    big_avg, big_hidden_new, _ = ema_forward(big_hidden, big_value, decay, 0)
    big_avg = jax.block_until_ready(big_avg)
    big_ref_hidden = big_hidden - (big_hidden - big_value) * (1.0 - decay)
    big_ref_avg = big_ref_hidden / (1.0 - decay ** 1)
    assert jnp.allclose(big_avg, big_ref_avg, atol=1e-5, rtol=1e-5)
    assert jnp.allclose(big_hidden_new, big_ref_hidden, atol=1e-5, rtol=1e-5)

    print("KERNEL_OK")
</pallas_src>

<mosaic_0001>
module attributes {stable_mosaic.version = 11 : i64} {
  func.func @_ema_kernel(%arg0: i32, %arg1: memref<2xf32, #tpu.memory_space<smem>>, %arg2: memref<16x128xf32, #tpu.memory_space<vmem>>, %arg3: memref<16x128xf32, #tpu.memory_space<vmem>>, %arg4: memref<16x128xf32, #tpu.memory_space<vmem>>, %arg5: memref<16x128xf32, #tpu.memory_space<vmem>>) attributes {dimension_semantics = [#tpu.dimension_semantics<parallel>], iteration_bounds = array<i64: 1>, scalar_prefetch = 1 : i64, scratch_operands = 0 : i64, tpu.core_type = #tpu.core_type<tc>, window_params = [{transform_indices = @transform_0, window_bounds = array<i64: 16, 128>}, {transform_indices = @transform_1, window_bounds = array<i64: 16, 128>}, {transform_indices = @transform_2, window_bounds = array<i64: 16, 128>}, {transform_indices = @transform_3, window_bounds = array<i64: 16, 128>}]} {
    %c0 = arith.constant 0 : index
    %0 = memref.load %arg1[%c0] : memref<2xf32, #tpu.memory_space<smem>>
    %c1 = arith.constant 1 : index
    %1 = memref.load %arg1[%c1] : memref<2xf32, #tpu.memory_space<smem>>
    %c0_0 = arith.constant 0 : index
    %c0_1 = arith.constant 0 : index
    %2 = vector.load %arg2[%c0_0, %c0_1] : memref<16x128xf32, #tpu.memory_space<vmem>>, vector<16x128xf32>
    %c0_2 = arith.constant 0 : index
    %c0_3 = arith.constant 0 : index
    %3 = vector.load %arg3[%c0_2, %c0_3] : memref<16x128xf32, #tpu.memory_space<vmem>>, vector<16x128xf32>
    %4 = arith.subf %2, %3 : vector<16x128xf32>
    %5 = vector.broadcast %0 : f32 to vector<16x128xf32>
    %6 = arith.mulf %4, %5 : vector<16x128xf32>
    %7 = arith.subf %2, %6 : vector<16x128xf32>
    %c0_4 = arith.constant 0 : index
    %c0_5 = arith.constant 0 : index
    %8 = vector.load %arg4[%c0_4, %c0_5] : memref<16x128xf32, #tpu.memory_space<vmem>>, vector<16x128xf32>
    tpu.vector_store %arg4[%c0_4, %c0_5], %7 {strides = array<i32>} : memref<16x128xf32, #tpu.memory_space<vmem>>, vector<16x128xf32>,
    %9 = vector.broadcast %1 : f32 to vector<16x128xf32>
    %10 = arith.mulf %7, %9 : vector<16x128xf32>
    %c0_6 = arith.constant 0 : index
    %c0_7 = arith.constant 0 : index
    %11 = vector.load %arg5[%c0_6, %c0_7] : memref<16x128xf32, #tpu.memory_space<vmem>>, vector<16x128xf32>
    tpu.vector_store %arg5[%c0_6, %c0_7], %10 {strides = array<i32>} : memref<16x128xf32, #tpu.memory_space<vmem>>, vector<16x128xf32>,
    return
  }
  func.func @transform_0(%arg0: i32, %arg1: memref<2xf32, #tpu.memory_space<smem>>) -> (i32, i32) {
    %c0_i32 = arith.constant 0 : i32
    %c0_i32_0 = arith.constant 0 : i32
    return %arg0, %c0_i32 : i32, i32
  }
  func.func @transform_1(%arg0: i32, %arg1: memref<2xf32, #tpu.memory_space<smem>>) -> (i32, i32) {
    %c0_i32 = arith.constant 0 : i32
    %c0_i32_0 = arith.constant 0 : i32
    return %arg0, %c0_i32 : i32, i32
  }
  func.func @transform_2(%arg0: i32, %arg1: memref<2xf32, #tpu.memory_space<smem>>) -> (i32, i32) {
    %c0_i32 = arith.constant 0 : i32
    %c0_i32_0 = arith.constant 0 : i32
    return %arg0, %c0_i32 : i32, i32
  }
  func.func @transform_3(%arg0: i32, %arg1: memref<2xf32, #tpu.memory_space<smem>>) -> (i32, i32) {
    %c0_i32 = arith.constant 0 : i32
    %c0_i32_0 = arith.constant 0 : i32
    return %arg0, %c0_i32 : i32, i32
  }
}

</mosaic_0001>

<bundles_post_ra>
// kernel: tpu_custom_call.1
= control target key start
LH: loop header
LB: loop body
LE: loop exit
PB: predicated region body
PF: predicated region fallthrough
CT: control target
= control target key end

     0   :  { %s274_s0 = inlined_call_operand.vmem [shape: f32[2], index: 0, kind: input, shape index: {}]   ;;  %s275_s1 = inlined_call_operand.hbm [shape: f32[16,128], index: 1, kind: input, shape index: {}, may-alias: {1,3}]   ;;  %s276_s2 = inlined_call_operand.vmem [shape: f32[16,128], index: 2, kind: input, shape index: {}]   ;;  %s277_s3 = inlined_call_operand.hbm [shape: f32[16,128], index: 3, kind: output, shape index: {0}, may-alias: {1,3}]   ;;  %s278_s4 = inlined_call_operand.hbm [shape: f32[16,128], index: 4, kind: output, shape index: {1}]  }
   0x1   :  { %s10_s17 = sshll.u32 %s274_s0, 4  ;;  %s11_s17 = int_to_ptr.vmem [resolvable:$true] %s10_s17 }
   0x2   :  { %s96_s18 = scalar_lea.vmem %s11_s17, 16  ;;  %p101_p1 = scmp.lt.s32.totalorder %s11_s17, %s11_s17 }
   0x3   :  { %p97_p0 = scmp.ne.s32.totalorder %s11_s17, %s96_s18  ;;  %p102_p2 = scmp.lt.s32.totalorder %s96_s18, %s96_s18 }
   0x5   :  { %p103_p3 = por %p102_p2, %p101_p1 }
   0x7   :  { %p104_p4 = pnand %p103_p3, %p97_p0 }
   0x9   :  { %107 = shalt.err (!%p104_p4)  }
   0xa   :  { %s182_s19 = smov [#allocation3]  }
   0xb   :  { %13 = dma.vmem_to_smem %s11_s17, 16, %s182_s19, [#allocation2] }
   0xc   :  { %174 = dma.done.wait [#allocation2], 16 }
   0xd   :  { %175 = vsyncadd [#allocation2], 4294967280 }
   0xe   :  { %15 = sfence }
   0xf   :  { %16 = vsyncpa [#allocation5], 0 }
  0x10   :  { %17 = vsyncpa [#allocation6], 0 }
  0x11   :  { %18 = vsyncpa [#allocation9], 0  ;;  %s183_s20 = smov [#allocation4]   ;;  %s108_s23 = scalar_lea.hbm %s275_s1, 256 }
  0x12   :  { %s24_s21 = sshll.u32 %s183_s20, 4  ;;  %p109_p5 = scmp.ne.s32.totalorder %s275_s1, %s108_s23  ;;  %s25_s21 = int_to_ptr.vmem [resolvable:$true] %s24_s21 }
  0x13   :  { %p112_p6 = scmp.lt.u32.totalorder %s108_s23, %s275_s1 }
  0x15   :  { %p114_p7 = pnand %p112_p6, %p109_p5 }
  0x17   :  { %117 = shalt.err (!%p114_p7)
}
  0x18   :  { %s118_s28 = scalar_lea.vmem %s25_s21, 256  ;;  %p123_p9 = scmp.lt.s32.totalorder %s25_s21, %s25_s21 }
  0x19   :  { %p119_p8 = scmp.ne.s32.totalorder %s25_s21, %s118_s28  ;;  %p124_p10 = scmp.lt.s32.totalorder %s118_s28, %s118_s28 }
  0x1b   :  { %p125_p11 = por %p124_p10, %p123_p9 }
  0x1d   :  { %p126_p12 = pnand %p125_p11, %p119_p8 }
  0x1f   :  { %129 = shalt.err (!%p126_p12)
}
  0x20   :  { %s184_s29 = smov 128   ;;  %s185_s30 = smov 8  }
  0x21   :  { %30 = dma.hbm_to_vmem [thread:$0]  %s275_s1, 256, %s25_s21, [#allocation5], %s184_s29, %s184_s29, %s185_s30  }
  0x22   :  { %176 = dma.done.wait [#allocation5], 256  }
  0x23   :  { %177 = vsyncadd [#allocation5], 4294967040  ;;  %s36_s7 = sld [smem:[#allocation3]]  ;;  %s89_s8 = sld [smem:[#allocation3 + $0x1]]  ;;  %v38_v0 = vld [vmem:[#allocation4] sm:$0xff]  ;;  %v39_v3 = vld [vmem:[#allocation4 + $0x8] sm:$0xff] }
  0x24   :  { %v40_v1 = vld [vmem:[%s276_s2] sm:$0xff]  ;;  %v41_v5 = vld [vmem:[%s276_s2 + $0x8] sm:$0xff]  ;;  %s186_s13 = smov [#allocation7]   ;;  %s187_s14 = smov [#allocation8]  }
  0x25   :  { %v42_v4 = vsub.f32 %v38_v0, %v40_v1  ;;  %v43_v6 = vsub.f32 %v39_v3, %v41_v5  ;;  %s61_s1 = sshll.u32 %s186_s13, 4  ;;  %s73_s15 = sshll.u32 %s187_s14, 4  ;;  %s62_s1 = int_to_ptr.vmem [resolvable:$true] %s61_s1  ;;  %s237_s15 = int_to_ptr.vmem [resolvable:$true] %s73_s15 }
  0x26   :  { %s130_s16 = scalar_lea.vmem %s62_s1, 256  ;;  %p135_p0 = scmp.lt.s32.totalorder %s62_s1, %s62_s1 }
  0x27   :  { %p131_p13 = scmp.ne.s32.totalorder %s62_s1, %s130_s16  ;;  %p136_p1 = scmp.lt.s32.totalorder %s130_s16, %s130_s16 }
  0x29   :  { %v44_v2 = vstv %s36_s7  ;;  %v51_v9 = vstv %s89_s8  ;;  %p137_p2 = por %p136_p1, %p135_p0 }
  0x2a   :  { %v45_v7 = vmul.f32 %v44_v2, %v42_v4  ;;  %v46_v8 = vmul.f32 %v44_v2, %v43_v6 }
  0x2b   :  { %p138_p3 = pnand %p137_p2, %p131_p13 }
  0x2c   :  { %v47_v10 = vsub.f32 %v38_v0, %v45_v7  ;;  %v48_v11 = vsub.f32 %v39_v3, %v46_v8 }
  0x2e   :  { %49 = vst [vmem:[#allocation7] sm:$0xff] %v47_v10  ;;  %v52_v12 = vmul.f32 %v51_v9, %v47_v10  ;;  %50 = vst [vmem:[#allocation7 + $0x8] sm:$0xff] %v48_v11  ;;  %v53_v13 = vmul.f32 %v51_v9, %v48_v11 }
  0x30   :  { %54 = vst [vmem:[#allocation8] sm:$0xff] %v52_v12 }
  0x31   :  { %141 = shalt.err (!%p138_p3)
}
  0x32   :  { %s142_s18 = scalar_lea.hbm %s277_s3, 256 }
  0x33   :  { %p143_p4 = scmp.ne.s32.totalorder %s277_s3, %s142_s18  ;;  %p146_p5 = scmp.lt.u32.totalorder %s142_s18, %s277_s3 }
  0x35   :  { %p148_p6 = pnand %p146_p5, %p143_p4 }
  0x37   :  { %151 = shalt.err (!%p148_p6)
}
  0x38   :  { %67 = dma.vmem_to_hbm [thread:$0]  %s62_s1, 256, %s277_s3, [#allocation6], %s184_s29, %s184_s29, %s185_s30   ;;  %55 = vst [vmem:[#allocation8 + $0x8] sm:$0xff] %v53_v13 }
  0x39   :  { %s152_s24 = scalar_lea.vmem %s237_s15, 256  ;;  %p157_p8 = scmp.lt.s32.totalorder %s237_s15, %s237_s15 }
  0x3a   :  { %p153_p7 = scmp.ne.s32.totalorder %s237_s15, %s152_s24  ;;  %p158_p9 = scmp.lt.s32.totalorder %s152_s24, %s152_s24 }
  0x3c   :  { %p159_p10 = por %p158_p9, %p157_p8 }
  0x3e   :  { %p160_p11 = pnand %p159_p10, %p153_p7 }
  0x40   :  { %163 = shalt.err (!%p160_p11)
}
  0x41   :  { %s164_s27 = scalar_lea.hbm %s278_s4, 256 }
  0x42   :  { %p165_p12 = scmp.ne.s32.totalorder %s278_s4, %s164_s27  ;;  %p168_p13 = scmp.lt.u32.totalorder %s164_s27, %s278_s4 }
  0x44   :  { %p170_p0 = pnand %p168_p13, %p165_p12 }
  0x46   :  { %173 = shalt.err (!%p170_p0)
}
  0x47   :  { %79 = dma.vmem_to_hbm [thread:$0]  %s237_s15, 256, %s278_s4, [#allocation9], %s184_s29, %s184_s29, %s185_s30  }
  0x48   :  { %178 = dma.done.wait [#allocation6], 256  }
  0x49   :  { %179 = vsyncadd [#allocation6], 4294967040 }
  0x4a   :  { %180 = dma.done.wait [#allocation9], 256  }
  0x4b   :  { %181 = vsyncadd [#allocation9], 4294967040 }
  0x4c   :  { %86 = vsyncpa [#allocation5], 1 }
  0x4d   :  { %87 = vsyncpa [#allocation6], 1 }
  0x4e   :  { %88 = vsyncpa [#allocation9], 1 }

</bundles_post_ra>
